<compile_context>
chip_gen: v7x
topology: tpu7x:2x2x1
jax: 0.10.0
libtpu: 0.0.40
codegen_flags: <defaults>
</compile_context>

<pallas_src>
import math

import jax
import jax.numpy as jnp
from jax.experimental import pallas as pl
from jax.experimental.pallas import tpu as pltpu

LANE = 128  # TPU lane width: hidden (contraction/N) dims padded to a multiple of this


def _round_up(x, m):
    return ((x + m - 1) // m) * m


def _cdiv(a, b):
    return (a + b - 1) // b


def _pad2d(a, rows, cols):
    r, c = a.shape
    if (r, c) == (rows, cols):
        return a
    return jnp.pad(a, ((0, rows - r), (0, cols - c)))


def _mlp_kernel(obs_ref, act_ref, w1o_ref, w1a_ref, b1_ref,
                w2_ref, b2_ref, w3_ref, b3_ref, out_ref):
    # fc1 as split-K (no in-kernel concat, no lane padding of the tiny input dims).
    h1 = (jnp.dot(obs_ref[...], w1o_ref[...], preferred_element_type=jnp.float32)
          + jnp.dot(act_ref[...], w1a_ref[...], preferred_element_type=jnp.float32)
          + b1_ref[...])
    h1 = jnp.maximum(h1, 0.0).astype(w2_ref.dtype)
    # fc2 + relu
    h2 = jnp.dot(h1, w2_ref[...], preferred_element_type=jnp.float32) + b2_ref[...]
    h2 = jnp.maximum(h2, 0.0).astype(w3_ref.dtype)
    # fc3 (no activation); output last dim = obs_dim (unpadded)
    y = jnp.dot(h2, w3_ref[...], preferred_element_type=jnp.float32) + b3_ref[...]
    out_ref[...] = y.astype(out_ref.dtype)


def simple_dynamics_forward(obs, action, params, *, batch_tile=None,
                            compute_dtype=jnp.bfloat16):
    """Fused forward pass: relu(fc1(cat(obs, act))) -> relu(fc2) -> fc3.

    compute_dtype=None keeps everything f32 (matches the torch reference to ~1e-5);
    the bf16 default trades ~1e-2 relative error for MXU-peak throughput.
    """
    B, obs_dim = obs.shape
    Ba, act_dim = action.shape
    assert B == Ba
    w1, b1, w2, b2, w3, b3 = params
    in_dim, hidden = w1.shape
    assert in_dim == obs_dim + act_dim

    cd = jnp.dtype(compute_dtype) if compute_dtype is not None else jnp.dtype(jnp.float32)
    sublane = 16 if cd.itemsize == 2 else 8

    # ---- hidden-dim lane padding (exact, see header) ----
    hid_p = _round_up(hidden, LANE)

    # ---- balanced batch tiling; >=2 grid steps when possible (v7x dual-TC) ----
    if batch_tile is None:
        n_tiles = max(_cdiv(B, 512), min(2, _cdiv(B, sublane)))
        batch_tile = _round_up(_cdiv(B, n_tiles), sublane)
    batch_tile = _round_up(batch_tile, sublane)
    B_pad = _round_up(B, batch_tile)
    grid = (B_pad // batch_tile,)

    # ---- inputs: row-pad only (last dim stays the true obs_dim / act_dim) ----
    obs_p = _pad2d(obs, B_pad, obs_dim).astype(cd)
    act_p = _pad2d(action, B_pad, act_dim).astype(cd)

    # ---- weights: split W1, pad hidden dims, cast to compute dtype ----
    w1o = _pad2d(w1[:obs_dim, :], obs_dim, hid_p).astype(cd)
    w1a = _pad2d(w1[obs_dim:, :], act_dim, hid_p).astype(cd)
    w2p = _pad2d(w2, hid_p, hid_p).astype(cd)
    w3p = _pad2d(w3, hid_p, obs_dim).astype(cd)
    b1p = _pad2d(b1.reshape(1, -1), 1, hid_p).astype(jnp.float32)
    b2p = _pad2d(b2.reshape(1, -1), 1, hid_p).astype(jnp.float32)
    b3p = b3.reshape(1, obs_dim).astype(jnp.float32)

    # ---- explicit VMEM budget (single-buffered weights + double-buffered tiles
    #      + f32 h1/h2 intermediates), with headroom under v7x's 64 MiB ----
    wbytes = ((obs_dim + act_dim + hid_p) * hid_p + hid_p * obs_dim) * cd.itemsize
    bbytes = (2 * hid_p + obs_dim) * 4
    tbytes = 2 * batch_tile * (obs_dim + act_dim) * cd.itemsize + 2 * batch_tile * obs_dim * 4
    ibytes = 2 * batch_tile * hid_p * 4
    vmem_limit = min(56 << 20, max(int(2 * (wbytes + bbytes + tbytes + ibytes)) + (8 << 20),
                                   32 << 20))
    # TODO(synk): for hidden >= ~2048 f32 (w2 alone >= 16 MiB) tile the fc2 contraction
    # with a second "arbitrary" grid axis + f32 VMEM accumulator instead of keeping w2
    # fully resident.

    out_dtype = obs.dtype

    def make_call(buffer_weights):
        if buffer_weights:
            wspec = lambda shape: pl.BlockSpec(shape, lambda i: (0, 0),
                                               pipeline_mode=pl.Buffered(1))
        else:
            wspec = lambda shape: pl.BlockSpec(shape, lambda i: (0, 0))
        return pl.pallas_call(
            _mlp_kernel,
            out_shape=jax.ShapeDtypeStruct((B_pad, obs_dim), out_dtype),
            grid_spec=pltpu.PrefetchScalarGridSpec(
                num_scalar_prefetch=0,
                grid=grid,
                in_specs=[
                    pl.BlockSpec((batch_tile, obs_dim), lambda i: (i, 0)),  # obs
                    pl.BlockSpec((batch_tile, act_dim), lambda i: (i, 0)),  # action
                    wspec((obs_dim, hid_p)),   # W1_obs
                    wspec((act_dim, hid_p)),   # W1_act
                    wspec((1, hid_p)),         # b1
                    wspec((hid_p, hid_p)),     # W2
                    wspec((1, hid_p)),         # b2
                    wspec((hid_p, obs_dim)),   # W3
                    wspec((1, obs_dim)),       # b3
                ],
                out_specs=pl.BlockSpec((batch_tile, obs_dim), lambda i: (i, 0)),
            ),
            compiler_params=pltpu.CompilerParams(
                dimension_semantics=("parallel",),
                vmem_limit_bytes=vmem_limit),
        )

    args = (obs_p, act_p, w1o, w1a, b1p, w2p, b2p, w3p, b3p)
    try:
        out = make_call(True)(*args)
    except Exception:
        # Fallback for jax versions that reject single-buffered (Buffered(1)) specs.
        out = make_call(False)(*args)

    # Padded batch rows (if any) carry bias-propagated garbage -> slice them off.
    return out if B_pad == B else out[:B]


def init_params(key, obs_dim, action_dim, hidden_size, dtype=jnp.float32):
    """Deterministic init mimicking torch.nn.Linear default (U[-1/sqrt(fan_in), ...])."""
    in_dim = obs_dim + action_dim
    keys = jax.random.split(key, 6)

    def linear(kw, kb, fan_in, fan_out):
        bound = 1.0 / math.sqrt(fan_in)
        w = jax.random.uniform(kw, (fan_in, fan_out), dtype, -bound, bound)
        b = jax.random.uniform(kb, (fan_out,), dtype, -bound, bound)
        return w, b

    w1, b1 = linear(keys[0], keys[1], in_dim, hidden_size)
    w2, b2 = linear(keys[2], keys[3], hidden_size, hidden_size)
    w3, b3 = linear(keys[4], keys[5], hidden_size, obs_dim)
    return (w1, b1, w2, b2, w3, b3)


def reference_forward(obs, action, params):
    w1, b1, w2, b2, w3, b3 = params
    x = jnp.concatenate([obs, action], axis=-1)
    x = jnp.maximum(x @ w1 + b1, 0.0)
    x = jnp.maximum(x @ w2 + b2, 0.0)
    return x @ w3 + b3


if __name__ == "__main__":
    obs_dim, action_dim, hidden_size = 8, 4, 32
    batch = 6  # deliberately not sublane-aligned to exercise the row round-up path

    key = jax.random.PRNGKey(0)
    k_obs, k_act, k_param = jax.random.split(key, 3)

    obs = jax.random.normal(k_obs, (batch, obs_dim), jnp.float32)
    action = jax.random.normal(k_act, (batch, action_dim), jnp.float32)
    params = init_params(k_param, obs_dim, action_dim, hidden_size)

    ref = reference_forward(obs, action, params)

    # Strict f32 path: must match the (torch-equivalent) reference tightly.
    out_f32 = jax.block_until_ready(
        simple_dynamics_forward(obs, action, params, compute_dtype=None))
    assert out_f32.shape == (batch, obs_dim)
    assert jnp.allclose(out_f32, ref, atol=1e-5, rtol=1e-5), "f32 mismatch vs reference"

    # Default (bf16 compute) path: looser tolerance, exercises the perf configuration.
    out_bf16 = jax.block_until_ready(simple_dynamics_forward(obs, action, params))
    assert out_bf16.shape == (batch, obs_dim)
    assert jnp.allclose(out_bf16, ref, atol=5e-2, rtol=5e-2), "bf16 mismatch vs reference"

    print("KERNEL_OK")
</pallas_src>

<mosaic_0001>
module attributes {stable_mosaic.version = 11 : i64} {
  func.func @_mlp_kernel(%arg0: i32, %arg1: memref<8x8xf32, #tpu.memory_space<vmem>>, %arg2: memref<8x4xf32, #tpu.memory_space<vmem>>, %arg3: memref<8x128xf32, #tpu.memory_space<vmem>>, %arg4: memref<4x128xf32, #tpu.memory_space<vmem>>, %arg5: memref<1x128xf32, #tpu.memory_space<vmem>>, %arg6: memref<128x128xf32, #tpu.memory_space<vmem>>, %arg7: memref<1x128xf32, #tpu.memory_space<vmem>>, %arg8: memref<128x8xf32, #tpu.memory_space<vmem>>, %arg9: memref<1x8xf32, #tpu.memory_space<vmem>>, %arg10: memref<8x8xf32, #tpu.memory_space<vmem>>) attributes {dimension_semantics = [#tpu.dimension_semantics<parallel>], iteration_bounds = array<i64: 1>, scalar_prefetch = 0 : i64, scratch_operands = 0 : i64, tpu.core_type = #tpu.core_type<tc>, window_params = [{transform_indices = @transform_0, window_bounds = array<i64: 8, 8>}, {transform_indices = @transform_1, window_bounds = array<i64: 8, 4>}, {pipeline_mode = #tpu.pipeline_mode<synchronous>, transform_indices = @transform_2, window_bounds = array<i64: 8, 128>}, {pipeline_mode = #tpu.pipeline_mode<synchronous>, transform_indices = @transform_3, window_bounds = array<i64: 4, 128>}, {pipeline_mode = #tpu.pipeline_mode<synchronous>, transform_indices = @transform_4, window_bounds = array<i64: 1, 128>}, {pipeline_mode = #tpu.pipeline_mode<synchronous>, transform_indices = @transform_5, window_bounds = array<i64: 128, 128>}, {pipeline_mode = #tpu.pipeline_mode<synchronous>, transform_indices = @transform_6, window_bounds = array<i64: 1, 128>}, {pipeline_mode = #tpu.pipeline_mode<synchronous>, transform_indices = @transform_7, window_bounds = array<i64: 128, 8>}, {pipeline_mode = #tpu.pipeline_mode<synchronous>, transform_indices = @transform_8, window_bounds = array<i64: 1, 8>}, {transform_indices = @transform_9, window_bounds = array<i64: 8, 8>}]} {
    %c0 = arith.constant 0 : index
    %c0_0 = arith.constant 0 : index
    %0 = vector.load %arg1[%c0, %c0_0] : memref<8x8xf32, #tpu.memory_space<vmem>>, vector<8x8xf32>
    %c0_1 = arith.constant 0 : index
    %c0_2 = arith.constant 0 : index
    %1 = vector.load %arg3[%c0_1, %c0_2] : memref<8x128xf32, #tpu.memory_space<vmem>>, vector<8x128xf32>
    %cst = arith.constant dense<0.000000e+00> : vector<8x128xf32>
    %2 = tpu.matmul %0, %1, %cst {dimension_numbers = #tpu.dot_dimension_numbers<[1], [0], [0], [1], [0, 0, 1, 1], [], []>} : vector<8x8xf32>, vector<8x128xf32>, vector<8x128xf32> -> vector<8x128xf32>
    %c0_3 = arith.constant 0 : index
    %c0_4 = arith.constant 0 : index
    %3 = vector.load %arg2[%c0_3, %c0_4] : memref<8x4xf32, #tpu.memory_space<vmem>>, vector<8x4xf32>
    %c0_5 = arith.constant 0 : index
    %c0_6 = arith.constant 0 : index
    %4 = vector.load %arg4[%c0_5, %c0_6] : memref<4x128xf32, #tpu.memory_space<vmem>>, vector<4x128xf32>
    %cst_7 = arith.constant dense<0.000000e+00> : vector<8x128xf32>
    %5 = tpu.matmul %3, %4, %cst_7 {dimension_numbers = #tpu.dot_dimension_numbers<[1], [0], [0], [1], [0, 0, 1, 1], [], []>} : vector<8x4xf32>, vector<4x128xf32>, vector<8x128xf32> -> vector<8x128xf32>
    %6 = arith.addf %2, %5 : vector<8x128xf32>
    %c0_8 = arith.constant 0 : index
    %c0_9 = arith.constant 0 : index
    %7 = vector.load %arg5[%c0_8, %c0_9] : memref<1x128xf32, #tpu.memory_space<vmem>>, vector<1x128xf32>
    %8 = vector.broadcast %7 : vector<1x128xf32> to vector<8x128xf32>
    %9 = arith.addf %6, %8 : vector<8x128xf32>
    %cst_10 = arith.constant 0.000000e+00 : f32
    %10 = vector.broadcast %cst_10 : f32 to vector<8x128xf32>
    %11 = arith.maximumf %9, %10 : vector<8x128xf32>
    %c0_11 = arith.constant 0 : index
    %c0_12 = arith.constant 0 : index
    %12 = vector.load %arg6[%c0_11, %c0_12] : memref<128x128xf32, #tpu.memory_space<vmem>>, vector<128x128xf32>
    %cst_13 = arith.constant dense<0.000000e+00> : vector<8x128xf32>
    %13 = tpu.matmul %11, %12, %cst_13 {dimension_numbers = #tpu.dot_dimension_numbers<[1], [0], [0], [1], [0, 0, 1, 1], [], []>} : vector<8x128xf32>, vector<128x128xf32>, vector<8x128xf32> -> vector<8x128xf32>
    %c0_14 = arith.constant 0 : index
    %c0_15 = arith.constant 0 : index
    %14 = vector.load %arg7[%c0_14, %c0_15] : memref<1x128xf32, #tpu.memory_space<vmem>>, vector<1x128xf32>
    %15 = vector.broadcast %14 : vector<1x128xf32> to vector<8x128xf32>
    %16 = arith.addf %13, %15 : vector<8x128xf32>
    %cst_16 = arith.constant 0.000000e+00 : f32
    %17 = vector.broadcast %cst_16 : f32 to vector<8x128xf32>
    %18 = arith.maximumf %16, %17 : vector<8x128xf32>
    %c0_17 = arith.constant 0 : index
    %c0_18 = arith.constant 0 : index
    %19 = vector.load %arg8[%c0_17, %c0_18] : memref<128x8xf32, #tpu.memory_space<vmem>>, vector<128x8xf32>
    %cst_19 = arith.constant dense<0.000000e+00> : vector<8x8xf32>
    %20 = tpu.matmul %18, %19, %cst_19 {dimension_numbers = #tpu.dot_dimension_numbers<[1], [0], [0], [1], [0, 0, 1, 1], [], []>} : vector<8x128xf32>, vector<128x8xf32>, vector<8x8xf32> -> vector<8x8xf32>
    %c0_20 = arith.constant 0 : index
    %c0_21 = arith.constant 0 : index
    %21 = vector.load %arg9[%c0_20, %c0_21] : memref<1x8xf32, #tpu.memory_space<vmem>>, vector<1x8xf32>
    %22 = vector.broadcast %21 : vector<1x8xf32> to vector<8x8xf32>
    %23 = arith.addf %20, %22 : vector<8x8xf32>
    %c0_22 = arith.constant 0 : index
    %c0_23 = arith.constant 0 : index
    %24 = vector.load %arg10[%c0_22, %c0_23] : memref<8x8xf32, #tpu.memory_space<vmem>>, vector<8x8xf32>
    tpu.vector_store %arg10[%c0_22, %c0_23], %23 {strides = array<i32>} : memref<8x8xf32, #tpu.memory_space<vmem>>, vector<8x8xf32>,
    return
  }
  func.func @transform_0(%arg0: i32) -> (i32, i32) {
    %c0_i32 = arith.constant 0 : i32
    %c0_i32_0 = arith.constant 0 : i32
    return %arg0, %c0_i32 : i32, i32
  }
  func.func @transform_1(%arg0: i32) -> (i32, i32) {
    %c0_i32 = arith.constant 0 : i32
    %c0_i32_0 = arith.constant 0 : i32
    return %arg0, %c0_i32 : i32, i32
  }
  func.func @transform_2(%arg0: i32) -> (i32, i32) {
    %c0_i32 = arith.constant 0 : i32
    %c0_i32_0 = arith.constant 0 : i32
    %c0_i32_1 = arith.constant 0 : i32
    return %c0_i32, %c0_i32_0 : i32, i32
  }
  func.func @transform_3(%arg0: i32) -> (i32, i32) {
    %c0_i32 = arith.constant 0 : i32
    %c0_i32_0 = arith.constant 0 : i32
    %c0_i32_1 = arith.constant 0 : i32
    return %c0_i32, %c0_i32_0 : i32, i32
  }
  func.func @transform_4(%arg0: i32) -> (i32, i32) {
    %c0_i32 = arith.constant 0 : i32
    %c0_i32_0 = arith.constant 0 : i32
    %c0_i32_1 = arith.constant 0 : i32
    return %c0_i32, %c0_i32_0 : i32, i32
  }
  func.func @transform_5(%arg0: i32) -> (i32, i32) {
    %c0_i32 = arith.constant 0 : i32
    %c0_i32_0 = arith.constant 0 : i32
    %c0_i32_1 = arith.constant 0 : i32
    return %c0_i32, %c0_i32_0 : i32, i32
  }
  func.func @transform_6(%arg0: i32) -> (i32, i32) {
    %c0_i32 = arith.constant 0 : i32
    %c0_i32_0 = arith.constant 0 : i32
    %c0_i32_1 = arith.constant 0 : i32
    return %c0_i32, %c0_i32_0 : i32, i32
  }
  func.func @transform_7(%arg0: i32) -> (i32, i32) {
    %c0_i32 = arith.constant 0 : i32
    %c0_i32_0 = arith.constant 0 : i32
    %c0_i32_1 = arith.constant 0 : i32
    return %c0_i32, %c0_i32_0 : i32, i32
  }
  func.func @transform_8(%arg0: i32) -> (i32, i32) {
    %c0_i32 = arith.constant 0 : i32
    %c0_i32_0 = arith.constant 0 : i32
    %c0_i32_1 = arith.constant 0 : i32
    return %c0_i32, %c0_i32_0 : i32, i32
  }
  func.func @transform_9(%arg0: i32) -> (i32, i32) {
    %c0_i32 = arith.constant 0 : i32
    %c0_i32_0 = arith.constant 0 : i32
    return %arg0, %c0_i32 : i32, i32
  }
}

module attributes {stable_mosaic.version = 11 : i64} {
  func.func @_mlp_kernel(%arg0: i32, %arg1: memref<8x8xf32, #tpu.memory_space<vmem>>, %arg2: memref<8x4xf32, #tpu.memory_space<vmem>>, %arg3: memref<8x128xf32, #tpu.memory_space<vmem>>, %arg4: memref<4x128xf32, #tpu.memory_space<vmem>>, %arg5: memref<1x128xf32, #tpu.memory_space<vmem>>, %arg6: memref<128x128xf32, #tpu.memory_space<vmem>>, %arg7: memref<1x128xf32, #tpu.memory_space<vmem>>, %arg8: memref<128x8xf32, #tpu.memory_space<vmem>>, %arg9: memref<1x8xf32, #tpu.memory_space<vmem>>, %arg10: memref<8x8xf32, #tpu.memory_space<vmem>>) attributes {dimension_semantics = [#tpu.dimension_semantics<parallel>], iteration_bounds = array<i64: 1>, scalar_prefetch = 0 : i64, scratch_operands = 0 : i64, tpu.core_type = #tpu.core_type<tc>, window_params = [{transform_indices = @transform_0, window_bounds = array<i64: 8, 8>}, {transform_indices = @transform_1, window_bounds = array<i64: 8, 4>}, {pipeline_mode = #tpu.pipeline_mode<synchronous>, transform_indices = @transform_2, window_bounds = array<i64: 8, 128>}, {pipeline_mode = #tpu.pipeline_mode<synchronous>, transform_indices = @transform_3, window_bounds = array<i64: 4, 128>}, {pipeline_mode = #tpu.pipeline_mode<synchronous>, transform_indices = @transform_4, window_bounds = array<i64: 1, 128>}, {pipeline_mode = #tpu.pipeline_mode<synchronous>, transform_indices = @transform_5, window_bounds = array<i64: 128, 128>}, {pipeline_mode = #tpu.pipeline_mode<synchronous>, transform_indices = @transform_6, window_bounds = array<i64: 1, 128>}, {pipeline_mode = #tpu.pipeline_mode<synchronous>, transform_indices = @transform_7, window_bounds = array<i64: 128, 8>}, {pipeline_mode = #tpu.pipeline_mode<synchronous>, transform_indices = @transform_8, window_bounds = array<i64: 1, 8>}, {transform_indices = @transform_9, window_bounds = array<i64: 8, 8>}]} {
    %c0 = arith.constant 0 : index
    %c0_0 = arith.constant 0 : index
    %0 = vector.load %arg1[%c0, %c0_0] : memref<8x8xf32, #tpu.memory_space<vmem>>, vector<8x8xf32>
    %c0_1 = arith.constant 0 : index
    %c0_2 = arith.constant 0 : index
    %1 = vector.load %arg3[%c0_1, %c0_2] : memref<8x128xf32, #tpu.memory_space<vmem>>, vector<8x128xf32>
    %cst = arith.constant dense<0.000000e+00> : vector<8x128xf32>
    %2 = tpu.matmul %0, %1, %cst {dimension_numbers = #tpu.dot_dimension_numbers<[1], [0], [0], [1], [0, 0, 1, 1], [], []>} : vector<8x8xf32>, vector<8x128xf32>, vector<8x128xf32> -> vector<8x128xf32>
    %c0_3 = arith.constant 0 : index
    %c0_4 = arith.constant 0 : index
    %3 = vector.load %arg2[%c0_3, %c0_4] : memref<8x4xf32, #tpu.memory_space<vmem>>, vector<8x4xf32>
    %c0_5 = arith.constant 0 : index
    %c0_6 = arith.constant 0 : index
    %4 = vector.load %arg4[%c0_5, %c0_6] : memref<4x128xf32, #tpu.memory_space<vmem>>, vector<4x128xf32>
    %cst_7 = arith.constant dense<0.000000e+00> : vector<8x128xf32>
    %5 = tpu.matmul %3, %4, %cst_7 {dimension_numbers = #tpu.dot_dimension_numbers<[1], [0], [0], [1], [0, 0, 1, 1], [], []>} : vector<8x4xf32>, vector<4x128xf32>, vector<8x128xf32> -> vector<8x128xf32>
    %6 = arith.addf %2, %5 : vector<8x128xf32>
    %c0_8 = arith.constant 0 : index
    %c0_9 = arith.constant 0 : index
    %7 = vector.load %arg5[%c0_8, %c0_9] : memref<1x128xf32, #tpu.memory_space<vmem>>, vector<1x128xf32>
    %8 = vector.broadcast %7 : vector<1x128xf32> to vector<8x128xf32>
    %9 = arith.addf %6, %8 : vector<8x128xf32>
    %cst_10 = arith.constant 0.000000e+00 : f32
    %10 = vector.broadcast %cst_10 : f32 to vector<8x128xf32>
    %11 = arith.maximumf %9, %10 : vector<8x128xf32>
    %c0_11 = arith.constant 0 : index
    %c0_12 = arith.constant 0 : index
    %12 = vector.load %arg6[%c0_11, %c0_12] : memref<128x128xf32, #tpu.memory_space<vmem>>, vector<128x128xf32>
    %cst_13 = arith.constant dense<0.000000e+00> : vector<8x128xf32>
    %13 = tpu.matmul %11, %12, %cst_13 {dimension_numbers = #tpu.dot_dimension_numbers<[1], [0], [0], [1], [0, 0, 1, 1], [], []>} : vector<8x128xf32>, vector<128x128xf32>, vector<8x128xf32> -> vector<8x128xf32>
    %c0_14 = arith.constant 0 : index
    %c0_15 = arith.constant 0 : index
    %14 = vector.load %arg7[%c0_14, %c0_15] : memref<1x128xf32, #tpu.memory_space<vmem>>, vector<1x128xf32>
    %15 = vector.broadcast %14 : vector<1x128xf32> to vector<8x128xf32>
    %16 = arith.addf %13, %15 : vector<8x128xf32>
    %cst_16 = arith.constant 0.000000e+00 : f32
    %17 = vector.broadcast %cst_16 : f32 to vector<8x128xf32>
    %18 = arith.maximumf %16, %17 : vector<8x128xf32>
    %c0_17 = arith.constant 0 : index
    %c0_18 = arith.constant 0 : index
    %19 = vector.load %arg8[%c0_17, %c0_18] : memref<128x8xf32, #tpu.memory_space<vmem>>, vector<128x8xf32>
    %cst_19 = arith.constant dense<0.000000e+00> : vector<8x8xf32>
    %20 = tpu.matmul %18, %19, %cst_19 {dimension_numbers = #tpu.dot_dimension_numbers<[1], [0], [0], [1], [0, 0, 1, 1], [], []>} : vector<8x128xf32>, vector<128x8xf32>, vector<8x8xf32> -> vector<8x8xf32>
    %c0_20 = arith.constant 0 : index
    %c0_21 = arith.constant 0 : index
    %21 = vector.load %arg9[%c0_20, %c0_21] : memref<1x8xf32, #tpu.memory_space<vmem>>, vector<1x8xf32>
    %22 = vector.broadcast %21 : vector<1x8xf32> to vector<8x8xf32>
    %23 = arith.addf %20, %22 : vector<8x8xf32>
    %c0_22 = arith.constant 0 : index
    %c0_23 = arith.constant 0 : index
    %24 = vector.load %arg10[%c0_22, %c0_23] : memref<8x8xf32, #tpu.memory_space<vmem>>, vector<8x8xf32>
    tpu.vector_store %arg10[%c0_22, %c0_23], %23 {strides = array<i32>} : memref<8x8xf32, #tpu.memory_space<vmem>>, vector<8x8xf32>,
    return
  }
  func.func @transform_0(%arg0: i32) -> (i32, i32) {
    %c0_i32 = arith.constant 0 : i32
    %c0_i32_0 = arith.constant 0 : i32
    return %arg0, %c0_i32 : i32, i32
  }
  func.func @transform_1(%arg0: i32) -> (i32, i32) {
    %c0_i32 = arith.constant 0 : i32
    %c0_i32_0 = arith.constant 0 : i32
    return %arg0, %c0_i32 : i32, i32
  }
  func.func @transform_2(%arg0: i32) -> (i32, i32) {
    %c0_i32 = arith.constant 0 : i32
    %c0_i32_0 = arith.constant 0 : i32
    %c0_i32_1 = arith.constant 0 : i32
    return %c0_i32, %c0_i32_0 : i32, i32
  }
  func.func @transform_3(%arg0: i32) -> (i32, i32) {
    %c0_i32 = arith.constant 0 : i32
    %c0_i32_0 = arith.constant 0 : i32
    %c0_i32_1 = arith.constant 0 : i32
    return %c0_i32, %c0_i32_0 : i32, i32
  }
  func.func @transform_4(%arg0: i32) -> (i32, i32) {
    %c0_i32 = arith.constant 0 : i32
    %c0_i32_0 = arith.constant 0 : i32
    %c0_i32_1 = arith.constant 0 : i32
    return %c0_i32, %c0_i32_0 : i32, i32
  }
  func.func @transform_5(%arg0: i32) -> (i32, i32) {
    %c0_i32 = arith.constant 0 : i32
    %c0_i32_0 = arith.constant 0 : i32
    %c0_i32_1 = arith.constant 0 : i32
    return %c0_i32, %c0_i32_0 : i32, i32
  }
  func.func @transform_6(%arg0: i32) -> (i32, i32) {
    %c0_i32 = arith.constant 0 : i32
    %c0_i32_0 = arith.constant 0 : i32
    %c0_i32_1 = arith.constant 0 : i32
    return %c0_i32, %c0_i32_0 : i32, i32
  }
  func.func @transform_7(%arg0: i32) -> (i32, i32) {
    %c0_i32 = arith.constant 0 : i32
    %c0_i32_0 = arith.constant 0 : i32
    %c0_i32_1 = arith.constant 0 : i32
    return %c0_i32, %c0_i32_0 : i32, i32
  }
  func.func @transform_8(%arg0: i32) -> (i32, i32) {
    %c0_i32 = arith.constant 0 : i32
    %c0_i32_0 = arith.constant 0 : i32
    %c0_i32_1 = arith.constant 0 : i32
    return %c0_i32, %c0_i32_0 : i32, i32
  }
  func.func @transform_9(%arg0: i32) -> (i32, i32) {
    %c0_i32 = arith.constant 0 : i32
    %c0_i32_0 = arith.constant 0 : i32
    return %arg0, %c0_i32 : i32, i32
  }
}

</mosaic_0001>

<bundles_post_ra>
// kernel: tpu_custom_call.1
= control target key start
LH: loop header
LB: loop body
LE: loop exit
PB: predicated region body
PF: predicated region fallthrough
CT: control target
= control target key end

     0   :  { %vm41_vm0 = vcmask 1043456   ;;  %v600_v2 = vmov 0.0   ;;  %vm37_vm1 = vcmask 31744   ;;  %vm115_vm2 = vcmask 64512   ;;  %s805_s0 = inlined_call_operand.vmem [shape: f32[8,8], index: 0, kind: input, shape index: {}]   ;;  %s806_s1 = inlined_call_operand.vmem [shape: f32[8,4], index: 1, kind: input, shape index: {}]   ;;  %s807_s2 = inlined_call_operand.vmem [shape: f32[8,128], index: 2, kind: input, shape index: {}]   ;;  %s808_s3 = inlined_call_operand.vmem [shape: f32[4,128], index: 3, kind: input, shape index: {}]   ;;  %s809_s4 = inlined_call_operand.vmem [shape: f32[1,128], index: 4, kind: input, shape index: {}]   ;;  %s810_s5 = inlined_call_operand.vmem [shape: f32[128,128], index: 5, kind: input, shape index: {}]   ;;  %s811_s6 = inlined_call_operand.vmem [shape: f32[1,128], index: 6, kind: input, shape index: {}]   ;;  %s812_s7 = inlined_call_operand.vmem [shape: f32[128,8], index: 7, kind: input, shape index: {}]   ;;  %s813_s8 = inlined_call_operand.vmem [shape: f32[1,8], index: 8, kind: input, shape index: {}]   ;;  %s814_s9 = inlined_call_operand.hbm [shape: f32[8,8], index: 9, kind: output, shape index: {}]  }
   0x1   :  { %v36_v0 = vld [vmem:[%s808_s3] sm:$0xf]  ;;  %444 = vmatprep.subr.mxu0 %v600_v2  ;;  %449 = vmatprep.subr.mxu1 %v600_v2  ;;  %vm601_vm3 = vmmov 0   ;;  %v199_v6 = vld [vmem:[%s810_s5 + $0x8] sm:$0xff]  ;;  %v200_v8 = vld [vmem:[%s810_s5 + $0x10] sm:$0xff]  ;;  %v602_v10 = vmov 0.0|0.0  }
   0x2   :  { %v34_v1 = vld [vmem:[%s807_s2] sm:$0xff]  ;;  %445 = vmatpush3.msk.msra.mxu0 %vm41_vm0, %v36_v0  ;;  %446 = vmatprep.mubr.msk.f32.mxu0 %vm601_vm3, %v600_v2  ;;  %v201_v9 = vld [vmem:[%s810_s5 + $0x18] sm:$0xff] }
   0x3   :  { %v35_v3 = vld [vmem:[%s806_s1] sm:$0xff]  ;;  %450 = vmatpush3.msra.mxu1 %v34_v1  ;;  %451 = vmatprep.mubr.msk.f32.mxu1 %vm601_vm3, %v600_v2 }
   0x4   :  { %v33_v4 = vld [vmem:[%s805_s0] sm:$0xff]  ;;  %447 = vmatmul.mubr.msk.f32.vlgmr.msra.gmra.mrb[0].mxu0 %vm37_vm1, %v35_v3  ;;  %524 = vmatprep.subr.bf16.mxu0 %v602_v10 }
   0x5   :  { %v198_v5 = vld [vmem:[%s810_s5] sm:$0xff]  ;;  %452 = vmatmul.mubr.msk.f32.vlgmr.msra.gmra.mrb[0].mxu1 %vm115_vm2, %v33_v4  ;;  %486 = vmatprep.mubr.msk.f32.mxu0 %vm601_vm3, %v600_v2 }
   0x6   :  { %v525_v7 = vpack.c.bf16 %v199_v6, %v198_v5 }
   0x7   :  { %14 = vsyncpa [#allocation3], 0  ;;  %v528_v11 = vpack.c.bf16 %v201_v9, %v200_v8  ;;  %548 = vmatprep.subr.bf16.mxu1 %v602_v10  ;;  %v202_v12 = vld [vmem:[%s810_s5 + $0x20] sm:$0xff]  ;;  %v203_v13 = vld [vmem:[%s810_s5 + $0x28] sm:$0xff]  ;;  %521 = vmatprep.mubr.msk.f32.mxu1 %vm601_vm3, %v600_v2  ;;  %s603_s30 = smov [#allocation2]  }
   0x8   :  { %526 = vmatpush3.bf16.msra.mxu0 %v525_v7  ;;  %v531_v14 = vpack.c.bf16 %v203_v13, %v202_v12  ;;  %v204_v15 = vld [vmem:[%s810_s5 + $0x30] sm:$0xff]  ;;  %v205_v16 = vld [vmem:[%s810_s5 + $0x38] sm:$0xff]  ;;  %v206_v18 = vld [vmem:[%s810_s5 + $0x40] sm:$0xff]  ;;  %s392_s10 = sshll.u32 %s603_s30, 4  ;;  %s393_s10 = int_to_ptr.vmem [resolvable:$true] %s392_s10 }
   0x9   :  { %527 = vmatprep.subr.bf16.mxu0 %v602_v10  ;;  %v534_v17 = vpack.c.bf16 %v205_v16, %v204_v15  ;;  %v207_v19 = vld [vmem:[%s810_s5 + $0x48] sm:$0xff]  ;;  %v208_v21 = vld [vmem:[%s810_s5 + $0x50] sm:$0xff]  ;;  %v209_v22 = vld [vmem:[%s810_s5 + $0x58] sm:$0xff]  ;;  %p581_p1 = scmp.lt.s32.totalorder %s393_s10, %s393_s10 }
   0xa   :  { %v537_v20 = vpack.c.bf16 %v207_v19, %v206_v18  ;;  %v540_v23 = vpack.c.bf16 %v209_v22, %v208_v21  ;;  %v210_v24 = vld [vmem:[%s810_s5 + $0x60] sm:$0xff]  ;;  %v211_v25 = vld [vmem:[%s810_s5 + $0x68] sm:$0xff]  ;;  %v212_v27 = vld [vmem:[%s810_s5 + $0x70] sm:$0xff] }
   0xb   :  { %v543_v26 = vpack.c.bf16 %v211_v25, %v210_v24  ;;  %v213_v28 = vld [vmem:[%s810_s5 + $0x78] sm:$0xff]  ;;  %v292_v30 = vld [vmem:[%s812_s7] sm:$0xff]  ;;  %v293_v31 = vld [vmem:[%s812_s7 + $0x8] sm:$0xff] }
   0xc   :  { %529 = vmatpush3.bf16.msra.mxu0 %v528_v11  ;;  %v546_v29 = vpack.c.bf16 %v213_v28, %v212_v27  ;;  %v294_v32 = vld [vmem:[%s812_s7 + $0x10] sm:$0xff]  ;;  %v549_v33 = vpack.c.bf16 %v293_v31, %v292_v30  ;;  %v295_v34 = vld [vmem:[%s812_s7 + $0x18] sm:$0xff]  ;;  %v296_v36 = vld [vmem:[%s812_s7 + $0x20] sm:$0xff] }
   0xd   :  { %530 = vmatprep.subr.bf16.mxu0 %v602_v10  ;;  %v552_v35 = vpack.c.bf16 %v295_v34, %v294_v32  ;;  %v297_v37 = vld [vmem:[%s812_s7 + $0x28] sm:$0xff]  ;;  %v298_v39 = vld [vmem:[%s812_s7 + $0x30] sm:$0xff]  ;;  %v299_v40 = vld [vmem:[%s812_s7 + $0x38] sm:$0xff] }
   0xe   :  { %550 = vmatpush3.bf16.msra.mxu1 %v549_v33  ;;  %v555_v38 = vpack.c.bf16 %v297_v37, %v296_v36  ;;  %v558_v41 = vpack.c.bf16 %v299_v40, %v298_v39  ;;  %v300_v42 = vld [vmem:[%s812_s7 + $0x40] sm:$0xff]  ;;  %v301_v43 = vld [vmem:[%s812_s7 + $0x48] sm:$0xff]  ;;  %v302_v45 = vld [vmem:[%s812_s7 + $0x50] sm:$0xff] }
   0xf   :  { %551 = vmatprep.subr.bf16.mxu1 %v602_v10  ;;  %v561_v44 = vpack.c.bf16 %v301_v43, %v300_v42  ;;  %v303_v46 = vld [vmem:[%s812_s7 + $0x58] sm:$0xff]  ;;  %v304_v48 = vld [vmem:[%s812_s7 + $0x60] sm:$0xff]  ;;  %v305_v49 = vld [vmem:[%s812_s7 + $0x68] sm:$0xff] }
  0x10   :  { %532 = vmatpush3.bf16.msra.mxu0 %v531_v14  ;;  %v564_v47 = vpack.c.bf16 %v303_v46, %v302_v45  ;;  %v567_v50 = vpack.c.bf16 %v305_v49, %v304_v48  ;;  %v403_v53 = vld [vmem:[%s809_s4] ss:$0 sm:$0xff]  ;;  %v306_v59 = vld [vmem:[%s812_s7 + $0x70] sm:$0xff]  ;;  %v307_v60 = vld [vmem:[%s812_s7 + $0x78] sm:$0xff]  ;;  %s576_s7 = scalar_lea.vmem %s393_s10, 128 }
  0x11   :  { %533 = vmatprep.subr.bf16.mxu0 %v602_v10  ;;  %v570_v61 = vpack.c.bf16 %v307_v60, %v306_v59  ;;  %v404_v62 = vld [vmem:[%s811_s6] ss:$0 sm:$0xff]  ;;  %p577_p0 = scmp.ne.s32.totalorder %s393_s10, %s576_s7  ;;  %p582_p2 = scmp.lt.s32.totalorder %s576_s7, %s576_s7 }
  0x12   :  { %553 = vmatpush3.bf16.msra.mxu1 %v552_v35  ;;  %v405_v3 = vld [vmem:[%s813_s8] ss:$0 sm:$0xff] }
  0x13   :  { %554 = vmatprep.subr.bf16.mxu1 %v602_v10  ;;  %p583_p3 = por %p582_p2, %p581_p1 }
  0x14   :  { %535 = vmatpush3.bf16.msra.mxu0 %v534_v17 }
  0x15   :  { %536 = vmatprep.subr.bf16.mxu0 %v602_v10  ;;  %p584_p4 = pnand %p583_p3, %p577_p0 }
  0x16   :  { %556 = vmatpush3.bf16.msra.mxu1 %v555_v38 }
  0x17   :  { %557 = vmatprep.subr.bf16.mxu1 %v602_v10 }
  0x18   :  { %538 = vmatpush3.bf16.msra.mxu0 %v537_v20 }
  0x19   :  { %539 = vmatprep.subr.bf16.mxu0 %v602_v10 }
  0x1a   :  { %559 = vmatpush3.bf16.msra.mxu1 %v558_v41 }
  0x1b   :  { %560 = vmatprep.subr.bf16.mxu1 %v602_v10 }
  0x1c   :  { %541 = vmatpush3.bf16.msra.mxu0 %v540_v23 }
  0x1d   :  { %542 = vmatprep.subr.bf16.mxu0 %v602_v10 }
  0x1e   :  { %562 = vmatpush3.bf16.msra.mxu1 %v561_v44 }
  0x1f   :  { %563 = vmatprep.subr.bf16.mxu1 %v602_v10 }
  0x20   :  { %544 = vmatpush3.bf16.msra.mxu0 %v543_v26 }
  0x21   :  { %545 = vmatprep.subr.bf16.mxu0 %v602_v10 }
  0x22   :  { %565 = vmatpush3.bf16.msra.mxu1 %v564_v47 }
  0x23   :  { %566 = vmatprep.subr.bf16.mxu1 %v602_v10 }
  0x24   :  { %547 = vmatpush3.bf16.msra.mxu0 %v546_v29 }
  0x26   :  { %568 = vmatpush3.bf16.msra.mxu1 %v567_v50 }
  0x27   :  { %569 = vmatprep.subr.bf16.mxu1 %v602_v10 }
  0x2a   :  { %571 = vmatpush3.bf16.msra.mxu1 %v570_v61 }
  0xd7   :  { %v111_v51 = vpop.f32.mrb[0].mxu0 }
  0xd8   :  { %v185_v52 = vpop.f32.mrb[0].mxu1  ;;  %v448_v55 = vpop.f32.mrb[1].mxu0 }
  0xd9   :  { %v186_v54 = vadd.f32 %v185_v52, %v111_v51  ;;  %v453_v56 = vpop.f32.mrb[1].mxu1 }
  0xdb   :  { %v196_v57 = vadd.f32 %v403_v53, %v186_v54 }
  0xdd   :  { %v197_v58 = vmax.f32 %v196_v57, 0.0 }
  0xdf   :  { %487 = vmatmul.mubr.f32.vlgmr.msra.gmra.mrb[2].mxu0 %v197_v58 }
 0x1b2   :  { %v287_v63 = vpop.f32.mrb[2].mxu0 }
 0x1b3   :  { %v288_v0 = vadd.f32 %v404_v62, %v287_v63  ;;  %v488_v1 = vpop.f32.mrb[3].mxu0 }
 0x1b5   :  { %v291_v2 = vmax.f32 %v288_v0, 0.0 }
 0x1b7   :  { %522 = vmatmul.mubr.f32.vlgmr.msra.gmra.mrb[2].mxu1 %v291_v2 }
 0x28a   :  { %v381_v4 = vpop.f32.mrb[2].mxu1 }
 0x28b   :  { %v382_v5 = vadd.f32 %v405_v3, %v381_v4  ;;  %v523_v6 = vpop.f32.mrb[3].mxu1 }
 0x28d   :  { %385 = vst.msk [vmem:[#allocation2] sm:$0xff] %vm115_vm2, %v382_v5 }
 0x28e   :  { %587 = shalt.err (!%p584_p4)
}
 0x28f   :  { %s588_s12 = scalar_lea.hbm %s814_s9, 128 }
 0x290   :  { %p589_p5 = scmp.ne.s32.totalorder %s814_s9, %s588_s12  ;;  %p592_p6 = scmp.lt.u32.totalorder %s588_s12, %s814_s9 }
 0x292   :  { %p594_p7 = pnand %p592_p6, %p589_p5 }
 0x294   :  { %597 = shalt.err (!%p594_p7)
}
 0x295   :  { %395 = dma.vmem_to_hbm [thread:$0]  %s393_s10, 128, %s814_s9, [#allocation3]  }
 0x296   :  { %598 = dma.done.wait [#allocation3], 128  }
 0x297   :  { %599 = vsyncadd [#allocation3], 4294967168 }
 0x298   :  { %399 = vsyncpa [#allocation3], 1 }

// kernel: tpu_custom_call.1
= control target key start
LH: loop header
LB: loop body
LE: loop exit
PB: predicated region body
PF: predicated region fallthrough
CT: control target
= control target key end

     0   :  { %vm41_vm0 = vcmask 1043456   ;;  %v600_v2 = vmov 0.0   ;;  %vm37_vm1 = vcmask 31744   ;;  %vm115_vm2 = vcmask 64512   ;;  %s805_s0 = inlined_call_operand.vmem [shape: f32[8,8], index: 0, kind: input, shape index: {}]   ;;  %s806_s1 = inlined_call_operand.vmem [shape: f32[8,4], index: 1, kind: input, shape index: {}]   ;;  %s807_s2 = inlined_call_operand.vmem [shape: f32[8,128], index: 2, kind: input, shape index: {}]   ;;  %s808_s3 = inlined_call_operand.vmem [shape: f32[4,128], index: 3, kind: input, shape index: {}]   ;;  %s809_s4 = inlined_call_operand.vmem [shape: f32[1,128], index: 4, kind: input, shape index: {}]   ;;  %s810_s5 = inlined_call_operand.vmem [shape: f32[128,128], index: 5, kind: input, shape index: {}]   ;;  %s811_s6 = inlined_call_operand.vmem [shape: f32[1,128], index: 6, kind: input, shape index: {}]   ;;  %s812_s7 = inlined_call_operand.vmem [shape: f32[128,8], index: 7, kind: input, shape index: {}]   ;;  %s813_s8 = inlined_call_operand.vmem [shape: f32[1,8], index: 8, kind: input, shape index: {}]   ;;  %s814_s9 = inlined_call_operand.hbm [shape: f32[8,8], index: 9, kind: output, shape index: {}]  }
   0x1   :  { %v36_v0 = vld [vmem:[%s808_s3] sm:$0xf]  ;;  %444 = vmatprep.subr.mxu0 %v600_v2  ;;  %449 = vmatprep.subr.mxu1 %v600_v2  ;;  %vm601_vm3 = vmmov 0   ;;  %v199_v6 = vld [vmem:[%s810_s5 + $0x8] sm:$0xff]  ;;  %v200_v8 = vld [vmem:[%s810_s5 + $0x10] sm:$0xff]  ;;  %v602_v10 = vmov 0.0|0.0  }
   0x2   :  { %v34_v1 = vld [vmem:[%s807_s2] sm:$0xff]  ;;  %445 = vmatpush3.msk.msra.mxu0 %vm41_vm0, %v36_v0  ;;  %446 = vmatprep.mubr.msk.f32.mxu0 %vm601_vm3, %v600_v2  ;;  %v201_v9 = vld [vmem:[%s810_s5 + $0x18] sm:$0xff] }
   0x3   :  { %v35_v3 = vld [vmem:[%s806_s1] sm:$0xff]  ;;  %450 = vmatpush3.msra.mxu1 %v34_v1  ;;  %451 = vmatprep.mubr.msk.f32.mxu1 %vm601_vm3, %v600_v2 }
   0x4   :  { %v33_v4 = vld [vmem:[%s805_s0] sm:$0xff]  ;;  %447 = vmatmul.mubr.msk.f32.vlgmr.msra.gmra.mrb[0].mxu0 %vm37_vm1, %v35_v3  ;;  %524 = vmatprep.subr.bf16.mxu0 %v602_v10 }
   0x5   :  { %v198_v5 = vld [vmem:[%s810_s5] sm:$0xff]  ;;  %452 = vmatmul.mubr.msk.f32.vlgmr.msra.gmra.mrb[0].mxu1 %vm115_vm2, %v33_v4  ;;  %486 = vmatprep.mubr.msk.f32.mxu0 %vm601_vm3, %v600_v2 }
   0x6   :  { %v525_v7 = vpack.c.bf16 %v199_v6, %v198_v5 }
   0x7   :  { %14 = vsyncpa [#allocation3], 0  ;;  %v528_v11 = vpack.c.bf16 %v201_v9, %v200_v8  ;;  %548 = vmatprep.subr.bf16.mxu1 %v602_v10  ;;  %v202_v12 = vld [vmem:[%s810_s5 + $0x20] sm:$0xff]  ;;  %v203_v13 = vld [vmem:[%s810_s5 + $0x28] sm:$0xff]  ;;  %521 = vmatprep.mubr.msk.f32.mxu1 %vm601_vm3, %v600_v2  ;;  %s603_s30 = smov [#allocation2]  }
   0x8   :  { %526 = vmatpush3.bf16.msra.mxu0 %v525_v7  ;;  %v531_v14 = vpack.c.bf16 %v203_v13, %v202_v12  ;;  %v204_v15 = vld [vmem:[%s810_s5 + $0x30] sm:$0xff]  ;;  %v205_v16 = vld [vmem:[%s810_s5 + $0x38] sm:$0xff]  ;;  %v206_v18 = vld [vmem:[%s810_s5 + $0x40] sm:$0xff]  ;;  %s392_s10 = sshll.u32 %s603_s30, 4  ;;  %s393_s10 = int_to_ptr.vmem [resolvable:$true] %s392_s10 }
   0x9   :  { %527 = vmatprep.subr.bf16.mxu0 %v602_v10  ;;  %v534_v17 = vpack.c.bf16 %v205_v16, %v204_v15  ;;  %v207_v19 = vld [vmem:[%s810_s5 + $0x48] sm:$0xff]  ;;  %v208_v21 = vld [vmem:[%s810_s5 + $0x50] sm:$0xff]  ;;  %v209_v22 = vld [vmem:[%s810_s5 + $0x58] sm:$0xff]  ;;  %p581_p1 = scmp.lt.s32.totalorder %s393_s10, %s393_s10 }
   0xa   :  { %v537_v20 = vpack.c.bf16 %v207_v19, %v206_v18  ;;  %v540_v23 = vpack.c.bf16 %v209_v22, %v208_v21  ;;  %v210_v24 = vld [vmem:[%s810_s5 + $0x60] sm:$0xff]  ;;  %v211_v25 = vld [vmem:[%s810_s5 + $0x68] sm:$0xff]  ;;  %v212_v27 = vld [vmem:[%s810_s5 + $0x70] sm:$0xff] }
   0xb   :  { %v543_v26 = vpack.c.bf16 %v211_v25, %v210_v24  ;;  %v213_v28 = vld [vmem:[%s810_s5 + $0x78] sm:$0xff]  ;;  %v292_v30 = vld [vmem:[%s812_s7] sm:$0xff]  ;;  %v293_v31 = vld [vmem:[%s812_s7 + $0x8] sm:$0xff] }
   0xc   :  { %529 = vmatpush3.bf16.msra.mxu0 %v528_v11  ;;  %v546_v29 = vpack.c.bf16 %v213_v28, %v212_v27  ;;  %v294_v32 = vld [vmem:[%s812_s7 + $0x10] sm:$0xff]  ;;  %v549_v33 = vpack.c.bf16 %v293_v31, %v292_v30  ;;  %v295_v34 = vld [vmem:[%s812_s7 + $0x18] sm:$0xff]  ;;  %v296_v36 = vld [vmem:[%s812_s7 + $0x20] sm:$0xff] }
   0xd   :  { %530 = vmatprep.subr.bf16.mxu0 %v602_v10  ;;  %v552_v35 = vpack.c.bf16 %v295_v34, %v294_v32  ;;  %v297_v37 = vld [vmem:[%s812_s7 + $0x28] sm:$0xff]  ;;  %v298_v39 = vld [vmem:[%s812_s7 + $0x30] sm:$0xff]  ;;  %v299_v40 = vld [vmem:[%s812_s7 + $0x38] sm:$0xff] }
   0xe   :  { %550 = vmatpush3.bf16.msra.mxu1 %v549_v33  ;;  %v555_v38 = vpack.c.bf16 %v297_v37, %v296_v36  ;;  %v558_v41 = vpack.c.bf16 %v299_v40, %v298_v39  ;;  %v300_v42 = vld [vmem:[%s812_s7 + $0x40] sm:$0xff]  ;;  %v301_v43 = vld [vmem:[%s812_s7 + $0x48] sm:$0xff]  ;;  %v302_v45 = vld [vmem:[%s812_s7 + $0x50] sm:$0xff] }
   0xf   :  { %551 = vmatprep.subr.bf16.mxu1 %v602_v10  ;;  %v561_v44 = vpack.c.bf16 %v301_v43, %v300_v42  ;;  %v303_v46 = vld [vmem:[%s812_s7 + $0x58] sm:$0xff]  ;;  %v304_v48 = vld [vmem:[%s812_s7 + $0x60] sm:$0xff]  ;;  %v305_v49 = vld [vmem:[%s812_s7 + $0x68] sm:$0xff] }
  0x10   :  { %532 = vmatpush3.bf16.msra.mxu0 %v531_v14  ;;  %v564_v47 = vpack.c.bf16 %v303_v46, %v302_v45  ;;  %v567_v50 = vpack.c.bf16 %v305_v49, %v304_v48  ;;  %v403_v53 = vld [vmem:[%s809_s4] ss:$0 sm:$0xff]  ;;  %v306_v59 = vld [vmem:[%s812_s7 + $0x70] sm:$0xff]  ;;  %v307_v60 = vld [vmem:[%s812_s7 + $0x78] sm:$0xff]  ;;  %s576_s7 = scalar_lea.vmem %s393_s10, 128 }
  0x11   :  { %533 = vmatprep.subr.bf16.mxu0 %v602_v10  ;;  %v570_v61 = vpack.c.bf16 %v307_v60, %v306_v59  ;;  %v404_v62 = vld [vmem:[%s811_s6] ss:$0 sm:$0xff]  ;;  %p577_p0 = scmp.ne.s32.totalorder %s393_s10, %s576_s7  ;;  %p582_p2 = scmp.lt.s32.totalorder %s576_s7, %s576_s7 }
  0x12   :  { %553 = vmatpush3.bf16.msra.mxu1 %v552_v35  ;;  %v405_v3 = vld [vmem:[%s813_s8] ss:$0 sm:$0xff] }
  0x13   :  { %554 = vmatprep.subr.bf16.mxu1 %v602_v10  ;;  %p583_p3 = por %p582_p2, %p581_p1 }
  0x14   :  { %535 = vmatpush3.bf16.msra.mxu0 %v534_v17 }
  0x15   :  { %536 = vmatprep.subr.bf16.mxu0 %v602_v10  ;;  %p584_p4 = pnand %p583_p3, %p577_p0 }
  0x16   :  { %556 = vmatpush3.bf16.msra.mxu1 %v555_v38 }
  0x17   :  { %557 = vmatprep.subr.bf16.mxu1 %v602_v10 }
  0x18   :  { %538 = vmatpush3.bf16.msra.mxu0 %v537_v20 }
  0x19   :  { %539 = vmatprep.subr.bf16.mxu0 %v602_v10 }
  0x1a   :  { %559 = vmatpush3.bf16.msra.mxu1 %v558_v41 }
  0x1b   :  { %560 = vmatprep.subr.bf16.mxu1 %v602_v10 }
  0x1c   :  { %541 = vmatpush3.bf16.msra.mxu0 %v540_v23 }
  0x1d   :  { %542 = vmatprep.subr.bf16.mxu0 %v602_v10 }
  0x1e   :  { %562 = vmatpush3.bf16.msra.mxu1 %v561_v44 }
  0x1f   :  { %563 = vmatprep.subr.bf16.mxu1 %v602_v10 }
  0x20   :  { %544 = vmatpush3.bf16.msra.mxu0 %v543_v26 }
  0x21   :  { %545 = vmatprep.subr.bf16.mxu0 %v602_v10 }
  0x22   :  { %565 = vmatpush3.bf16.msra.mxu1 %v564_v47 }
  0x23   :  { %566 = vmatprep.subr.bf16.mxu1 %v602_v10 }
  0x24   :  { %547 = vmatpush3.bf16.msra.mxu0 %v546_v29 }
  0x26   :  { %568 = vmatpush3.bf16.msra.mxu1 %v567_v50 }
  0x27   :  { %569 = vmatprep.subr.bf16.mxu1 %v602_v10 }
  0x2a   :  { %571 = vmatpush3.bf16.msra.mxu1 %v570_v61 }
  0xd7   :  { %v111_v51 = vpop.f32.mrb[0].mxu0 }
  0xd8   :  { %v185_v52 = vpop.f32.mrb[0].mxu1  ;;  %v448_v55 = vpop.f32.mrb[1].mxu0 }
  0xd9   :  { %v186_v54 = vadd.f32 %v185_v52, %v111_v51  ;;  %v453_v56 = vpop.f32.mrb[1].mxu1 }
  0xdb   :  { %v196_v57 = vadd.f32 %v403_v53, %v186_v54 }
  0xdd   :  { %v197_v58 = vmax.f32 %v196_v57, 0.0 }
  0xdf   :  { %487 = vmatmul.mubr.f32.vlgmr.msra.gmra.mrb[2].mxu0 %v197_v58 }
 0x1b2   :  { %v287_v63 = vpop.f32.mrb[2].mxu0 }
 0x1b3   :  { %v288_v0 = vadd.f32 %v404_v62, %v287_v63  ;;  %v488_v1 = vpop.f32.mrb[3].mxu0 }
 0x1b5   :  { %v291_v2 = vmax.f32 %v288_v0, 0.0 }
 0x1b7   :  { %522 = vmatmul.mubr.f32.vlgmr.msra.gmra.mrb[2].mxu1 %v291_v2 }
 0x28a   :  { %v381_v4 = vpop.f32.mrb[2].mxu1 }
 0x28b   :  { %v382_v5 = vadd.f32 %v405_v3, %v381_v4  ;;  %v523_v6 = vpop.f32.mrb[3].mxu1 }
 0x28d   :  { %385 = vst.msk [vmem:[#allocation2] sm:$0xff] %vm115_vm2, %v382_v5 }
 0x28e   :  { %587 = shalt.err (!%p584_p4)
}
 0x28f   :  { %s588_s12 = scalar_lea.hbm %s814_s9, 128 }
 0x290   :  { %p589_p5 = scmp.ne.s32.totalorder %s814_s9, %s588_s12  ;;  %p592_p6 = scmp.lt.u32.totalorder %s588_s12, %s814_s9 }
 0x292   :  { %p594_p7 = pnand %p592_p6, %p589_p5 }
 0x294   :  { %597 = shalt.err (!%p594_p7)
}
 0x295   :  { %395 = dma.vmem_to_hbm [thread:$0]  %s393_s10, 128, %s814_s9, [#allocation3]  }
 0x296   :  { %598 = dma.done.wait [#allocation3], 128  }
 0x297   :  { %599 = vsyncadd [#allocation3], 4294967168 }
 0x298   :  { %399 = vsyncpa [#allocation3], 1 }

</bundles_post_ra>
